<compile_context>
chip_gen: v5e
topology: v5e:2x2
jax: 0.10.0
libtpu: 0.0.40
codegen_flags: <defaults>
</compile_context>

<pallas_src>
import functools
import math

import jax
import jax.numpy as jnp
from jax.experimental import pallas as pl
from jax.experimental.pallas import tpu as pltpu


# Largest finite bfloat16 value.  torch.nan_to_num substitutes +/-inf with
# float32 finfo.max (~3.4028e38), but that rounds to inf on the MXU's bf16
# input path; clamping to bf16-max (~0.4% smaller) keeps everything finite.
_BF16_MAX = 3.3895313892515355e38


def _vmem_budgets():
    """Returns (per-block VMEM budget, vmem_limit_bytes), generation aware."""
    try:
        cap = int(pltpu.get_tpu_info().vmem_capacity_bytes)
    except Exception:  # info unavailable -> assume the smallest (v7x-sized) VMEM
        cap = 64 * 1024 * 1024
    if cap >= 96 * 1024 * 1024:                      # v5e / v6e: 128 MiB physical
        return 48 * 1024 * 1024, 96 * 1024 * 1024
    return 20 * 1024 * 1024, 44 * 1024 * 1024        # v7x: 64 MiB physical


def _choose_tiles(S, B, F, Ep, budget):
    """Pick (seq tile, batch block) for the encode pass, budget-exact-ish.

    Per grid step VMEM ~ fixed (2x double-buffered bf16 weights + bias)
                       + per-batch-column stats blocks
                       + per-(seq x batch)-element streams/temporaries.
    Only the LAST TWO dims of a block carry the (8, 128) constraint, so the seq
    tile is unconstrained; the batch block must be a multiple of 8 or equal B.
    """
    fixed = 8 * F * Ep + 16 * Ep            # two bf16 weights (double-buffered) + bias
    per_elem = 4 * (10 * F + 5 * Ep)        # x in, out, f32/bf16 temps (conservative)
    per_col = 16 * F                        # mean/rstd blocks (double-buffered f32)

    bb = B if B <= 8 else max(8, min((B // 8) * 8, 32))
    avail = budget - fixed - per_col * bb
    ts = avail // (per_elem * bb)
    if ts < 8:
        while bb > 8 and (budget - fixed - per_col * bb) // (per_elem * bb) < 8:
            bb = max(8, bb - 8)
        avail = budget - fixed - per_col * bb
        ts = max(avail // (per_elem * bb), 8)
    # TODO(synk): for very large F*Ep, add an inner Ep grid axis (tiled weight /
    # output) so the fixed weight term stops dominating the budget.
    return int(min(max(ts, 8), S)), int(bb)


def _choose_stats_tile(S, B, F, bb, budget):
    per_elem = 24 * F                        # streamed x (double-buffered) + f32 temps
    avail = budget - 16 * F * bb
    ts = max(avail // (per_elem * bb), 8)
    return int(min(ts, S))


def _indicator_stats_kernel(x_ref, mean_ref, rstd_ref, sum_ref, ssq_ref, *, seq_len):
    """Accumulate indicator sum / sum-of-squares over seq; finalize mean & 1/std."""
    s_idx = pl.program_id(1)
    ts = x_ref.shape[0]

    x = x_ref[...]                                           # (TS, BB, F)
    nan_m = jnp.isnan(x)
    inf_m = jnp.isinf(x)
    ind = (nan_m.astype(jnp.float32) * -1.0
           + jnp.logical_and(inf_m, x > 0.0).astype(jnp.float32)
           + jnp.logical_and(inf_m, x < 0.0).astype(jnp.float32) * 2.0)

    # Mask rows past the true sequence length (ragged last seq tile).
    row = jax.lax.broadcasted_iota(jnp.int32, ind.shape, 0) + s_idx * ts
    ind = jnp.where(row < seq_len, ind, 0.0)

    @pl.when(s_idx == 0)
    def _():
        sum_ref[...] = jnp.zeros_like(sum_ref)
        ssq_ref[...] = jnp.zeros_like(ssq_ref)

    sum_ref[...] += jnp.sum(ind, axis=0)
    ssq_ref[...] += jnp.sum(ind * ind, axis=0)

    @pl.when(s_idx == pl.num_programs(1) - 1)
    def _():
        n = float(seq_len)
        # ddof=1 sample variance; S == 1 falls back to var = 0 (torch gives NaN).
        denom = float(max(seq_len - 1, 1))
        s1 = sum_ref[...]
        s2 = ssq_ref[...]
        mu = s1 * (1.0 / n)
        var = jnp.maximum((s2 - n * mu * mu) * (1.0 / denom), 0.0)
        mean_ref[...] = mu
        rstd_ref[...] = 1.0 / (jnp.sqrt(var) + 1e-6)


def _encode_kernel(x_ref, mean_ref, rstd_ref, w1_ref, w2_ref, b_ref, o_ref):
    # x_ref: (TS, BB, F); mean/rstd: (BB, F); w1/w2: (F, Ep) bf16;
    # b_ref: (1, Ep) f32; o_ref: (TS, BB, Ep) f32.
    x = x_ref[...]
    ts, bb, f = x.shape

    nan_m = jnp.isnan(x)
    inf_m = jnp.isinf(x)
    pos_m = jnp.logical_and(inf_m, x > 0.0)
    neg_m = jnp.logical_and(inf_m, x < 0.0)

    # Indicator: NaN -> -1, +inf -> +1, -inf -> +2, finite -> 0 (mul-add form).
    ind = (nan_m.astype(jnp.float32) * -1.0
           + pos_m.astype(jnp.float32)
           + neg_m.astype(jnp.float32) * 2.0)
    ind_n = jnp.clip((ind - mean_ref[...][None]) * rstd_ref[...][None],
                     -100.0, 100.0)

    # torch.nan_to_num(x, nan=0.0): NaN -> 0; +/-inf -> large finite sentinel
    # (bf16-max so the MXU's bf16 input path stays finite).
    sentinel = jnp.where(x > 0.0, _BF16_MAX, -_BF16_MAX)
    xc = jnp.where(nan_m, 0.0, jnp.where(inf_m, sentinel, x))

    # Linear(2F, E) split into two accumulating matmuls (no 2F-wide concat temp).
    # bf16 operands (same numerics as DEFAULT MXU precision), f32 accumulation.
    lhs_x = xc.reshape(ts * bb, f).astype(jnp.bfloat16)
    lhs_i = ind_n.reshape(ts * bb, f).astype(jnp.bfloat16)
    acc = jnp.dot(lhs_x, w1_ref[...], preferred_element_type=jnp.float32)
    acc = acc + jnp.dot(lhs_i, w2_ref[...], preferred_element_type=jnp.float32)
    acc = acc + b_ref[...]
    o_ref[...] = acc.reshape(ts, bb, -1).astype(o_ref.dtype)


def nan_handling_encoder(x, weight, bias):
    """x: (S, B, F); weight: (E, 2F); bias: (E,) -> (S, B, E) float32."""
    # TODO(synk): keep_nans=False path (plain nan_to_num + Linear(F, E)) not implemented.
    x = x.astype(jnp.float32)
    S, B, F = x.shape
    E = weight.shape[0]

    budget, vmem_limit = _vmem_budgets()

    # Lane-dense output: pad E to a multiple of 128 only when required (narrow last
    # dims lower to masked partial stores).  When padding triggers, the final
    # [..., :E] slice is one extra HBM pass over the output;
    # TODO(synk): fold that unpad into the downstream consumer instead.
    Ep = max(((E + 127) // 128) * 128, 128)
    pad_e = Ep - E

    w = weight.astype(jnp.float32)
    w1 = jnp.transpose(w[:, :F])                     # (F, E): values half of the Linear
    w2 = jnp.transpose(w[:, F:])                     # (F, E): indicator half
    b = bias.astype(jnp.float32)
    if pad_e:
        w1 = jnp.pad(w1, ((0, 0), (0, pad_e)))
        w2 = jnp.pad(w2, ((0, 0), (0, pad_e)))
        b = jnp.pad(b, (0, pad_e))
    # DEFAULT MXU precision truncates inputs to bf16 anyway; bf16 weights halve
    # their HBM DMA and (double-buffered) VMEM footprint for free.
    w1 = w1.astype(jnp.bfloat16)
    w2 = w2.astype(jnp.bfloat16)
    b = b.reshape(1, Ep)

    ts, bb = _choose_tiles(S, B, F, Ep, budget)
    tss = _choose_stats_tile(S, B, F, bb, budget)
    nb = pl.cdiv(B, bb)

    # Pass 1: indicator mean / inverse-std over the full seq axis -> (B, F) each.
    mean, rstd = pl.pallas_call(
        functools.partial(_indicator_stats_kernel, seq_len=S),
        out_shape=(jax.ShapeDtypeStruct((B, F), jnp.float32),
                   jax.ShapeDtypeStruct((B, F), jnp.float32)),
        grid=(nb, pl.cdiv(S, tss)),
        in_specs=[pl.BlockSpec((tss, bb, F), lambda i, s: (s, i, 0))],
        out_specs=(pl.BlockSpec((bb, F), lambda i, s: (i, 0)),
                   pl.BlockSpec((bb, F), lambda i, s: (i, 0))),
        scratch_shapes=[pltpu.VMEM((bb, F), jnp.float32),
                        pltpu.VMEM((bb, F), jnp.float32)],
        compiler_params=pltpu.CompilerParams(
            dimension_semantics=("parallel", "arbitrary"),
            vmem_limit_bytes=vmem_limit,
        ),
    )(x)

    # Pass 2: fused nan_to_num + indicator-normalize + Linear(2F, E).
    # Inner (last) grid axis walks seq tiles, so weights / bias / stats blocks stay
    # VMEM-resident (block index unchanged -> no re-DMA) while x / out stream.
    out = pl.pallas_call(
        _encode_kernel,
        out_shape=jax.ShapeDtypeStruct((S, B, Ep), jnp.float32),
        grid=(nb, pl.cdiv(S, ts)),
        in_specs=[
            pl.BlockSpec((ts, bb, F), lambda i, j: (j, i, 0)),
            pl.BlockSpec((bb, F), lambda i, j: (i, 0)),
            pl.BlockSpec((bb, F), lambda i, j: (i, 0)),
            pl.BlockSpec((F, Ep), lambda i, j: (0, 0)),
            pl.BlockSpec((F, Ep), lambda i, j: (0, 0)),
            pl.BlockSpec((1, Ep), lambda i, j: (0, 0)),
        ],
        out_specs=pl.BlockSpec((ts, bb, Ep), lambda i, j: (j, i, 0)),
        compiler_params=pltpu.CompilerParams(
            dimension_semantics=("parallel", "parallel"),
            vmem_limit_bytes=vmem_limit,
        ),
    )(x, mean, rstd, w1, w2, b)

    if pad_e:
        out = out[..., :E]
    return out


def _reference(x, weight, bias):
    """Pure-f32 (no-MXU) mirror of the PyTorch forward for verification."""
    x = x.astype(jnp.float32)
    nan_m = jnp.isnan(x)
    pos_m = jnp.logical_and(jnp.isinf(x), x > 0)
    neg_m = jnp.logical_and(jnp.isinf(x), x < 0)
    ind = (-1.0 * nan_m + 1.0 * pos_m + 2.0 * neg_m).astype(jnp.float32)
    mean = jnp.mean(ind, axis=0, keepdims=True)
    std = jnp.std(ind, axis=0, ddof=1, keepdims=True) + 1e-6
    ind_n = jnp.clip((ind - mean) / std, -100.0, 100.0)
    xc = jnp.nan_to_num(x)  # nan->0, +/-inf -> f32 finfo max/min (torch semantics)
    xcat = jnp.concatenate([xc, ind_n], axis=-1)            # (S, B, 2F)
    out = jnp.sum(xcat[:, :, None, :] * weight[None, None, :, :], axis=-1)
    return out + bias


if __name__ == "__main__":
    S, B, F, E = 8, 2, 4, 32  # seq, batch, num_features, emsize

    key = jax.random.PRNGKey(0)
    kw, kb, kx = jax.random.split(key, 3)

    # nn.Linear(2F, E) default init: U(-1/sqrt(in), 1/sqrt(in))
    in_features = 2 * F
    bound = 1.0 / math.sqrt(in_features)
    weight = jax.random.uniform(kw, (E, in_features), jnp.float32, -bound, bound)
    bias = jax.random.uniform(kb, (E,), jnp.float32, -bound, bound)

    x = jax.random.normal(kx, (S, B, F), jnp.float32)
    # sprinkle in NaN / +-Inf so the handling path is exercised
    x = x.at[0, 0, 1].set(jnp.nan)
    x = x.at[3, 1, 2].set(jnp.inf)
    x = x.at[5, 0, 3].set(-jnp.inf)
    x = x.at[7, 1, 0].set(jnp.nan)

    out = jax.block_until_ready(nan_handling_encoder(x, weight, bias))
    ref = jax.block_until_ready(_reference(x, weight, bias))

    assert out.shape == (S, B, E)
    # 2e-2 tolerance covers the bf16 MXU operand truncation and the bf16-safe
    # inf sentinel (~0.4% below torch's f32 finfo.max).
    assert bool(jnp.allclose(out, ref, rtol=2e-2, atol=2e-2)), "mismatch vs reference"

    print("KERNEL_OK")
</pallas_src>

<mosaic_0001>
module attributes {stable_mosaic.version = 11 : i64} {
  func.func @_indicator_stats_kernel(%arg0: i32, %arg1: i32, %arg2: memref<8x2x4xf32, #tpu.memory_space<vmem>>, %arg3: memref<2x4xf32, #tpu.memory_space<vmem>>, %arg4: memref<2x4xf32, #tpu.memory_space<vmem>>, %arg5: memref<2x4xf32, #tpu.memory_space<vmem>>, %arg6: memref<2x4xf32, #tpu.memory_space<vmem>>) attributes {dimension_semantics = [#tpu.dimension_semantics<parallel>, #tpu.dimension_semantics<arbitrary>], iteration_bounds = array<i64: 1, 1>, scalar_prefetch = 0 : i64, scratch_operands = 2 : i64, tpu.core_type = #tpu.core_type<tc>, window_params = [{transform_indices = @transform_0, window_bounds = array<i64: 8, 2, 4>}, {transform_indices = @transform_1, window_bounds = array<i64: 2, 4>}, {transform_indices = @transform_2, window_bounds = array<i64: 2, 4>}]} {
    %c0 = arith.constant 0 : index
    %c0_0 = arith.constant 0 : index
    %c0_1 = arith.constant 0 : index
    %0 = vector.load %arg2[%c0, %c0_0, %c0_1] : memref<8x2x4xf32, #tpu.memory_space<vmem>>, vector<8x2x4xf32>
    %1 = arith.cmpf one, %0, %0 : vector<8x2x4xf32>
    %2 = math.absf %0 : vector<8x2x4xf32>
    %cst = arith.constant 0x7F800000 : f32
    %3 = vector.broadcast %cst : f32 to vector<8x2x4xf32>
    %4 = arith.cmpf oeq, %2, %3 : vector<8x2x4xf32>
    %5 = arith.extui %1 : vector<8x2x4xi1> to vector<8x2x4xi32>
    %6 = arith.sitofp %5 : vector<8x2x4xi32> to vector<8x2x4xf32>
    %cst_2 = arith.constant -1.000000e+00 : f32
    %7 = vector.broadcast %cst_2 : f32 to vector<8x2x4xf32>
    %8 = arith.mulf %6, %7 : vector<8x2x4xf32>
    %cst_3 = arith.constant 0.000000e+00 : f32
    %9 = vector.broadcast %cst_3 : f32 to vector<8x2x4xf32>
    %10 = arith.cmpf ogt, %0, %9 : vector<8x2x4xf32>
    %11 = arith.andi %4, %10 : vector<8x2x4xi1>
    %12 = arith.extui %11 : vector<8x2x4xi1> to vector<8x2x4xi32>
    %13 = arith.sitofp %12 : vector<8x2x4xi32> to vector<8x2x4xf32>
    %14 = arith.addf %8, %13 : vector<8x2x4xf32>
    %cst_4 = arith.constant 0.000000e+00 : f32
    %15 = vector.broadcast %cst_4 : f32 to vector<8x2x4xf32>
    %16 = arith.cmpf olt, %0, %15 : vector<8x2x4xf32>
    %17 = arith.andi %4, %16 : vector<8x2x4xi1>
    %18 = arith.extui %17 : vector<8x2x4xi1> to vector<8x2x4xi32>
    %19 = arith.sitofp %18 : vector<8x2x4xi32> to vector<8x2x4xf32>
    %cst_5 = arith.constant 2.000000e+00 : f32
    %20 = vector.broadcast %cst_5 : f32 to vector<8x2x4xf32>
    %21 = arith.mulf %19, %20 : vector<8x2x4xf32>
    %22 = arith.addf %14, %21 : vector<8x2x4xf32>
    %23 = tpu.iota {dimensions = array<i32: 0>} : vector<8x2x4xi32>
    %c8_i32 = arith.constant 8 : i32
    %24 = arith.muli %arg1, %c8_i32 : i32
    %25 = vector.broadcast %24 : i32 to vector<8x2x4xi32>
    %26 = arith.addi %23, %25 : vector<8x2x4xi32>
    %c8_i32_6 = arith.constant 8 : i32
    %27 = vector.broadcast %c8_i32_6 : i32 to vector<8x2x4xi32>
    %28 = arith.cmpi slt, %26, %27 : vector<8x2x4xi32>
    %cst_7 = arith.constant 0.000000e+00 : f32
    %29 = vector.broadcast %cst_7 : f32 to vector<8x2x4xf32>
    %30 = arith.select %28, %22, %29 : vector<8x2x4xi1>, vector<8x2x4xf32>
    %c0_i32 = arith.constant 0 : i32
    %31 = arith.cmpi eq, %arg1, %c0_i32 : i32
    %32 = arith.extui %31 : i1 to i32
    %c0_i32_8 = arith.constant 0 : i32
    %33 = arith.cmpi ne, %32, %c0_i32_8 : i32
    scf.if %33 {
      %cst_21 = arith.constant 0.000000e+00 : f32
      %46 = vector.broadcast %cst_21 : f32 to vector<2x4xf32>
      %c0_22 = arith.constant 0 : index
      %c0_23 = arith.constant 0 : index
      %47 = vector.load %arg5[%c0_22, %c0_23] : memref<2x4xf32, #tpu.memory_space<vmem>>, vector<2x4xf32>
      tpu.vector_store %arg5[%c0_22, %c0_23], %46 {strides = array<i32>} : memref<2x4xf32, #tpu.memory_space<vmem>>, vector<2x4xf32>,
      %cst_24 = arith.constant 0.000000e+00 : f32
      %48 = vector.broadcast %cst_24 : f32 to vector<2x4xf32>
      %c0_25 = arith.constant 0 : index
      %c0_26 = arith.constant 0 : index
      %49 = vector.load %arg6[%c0_25, %c0_26] : memref<2x4xf32, #tpu.memory_space<vmem>>, vector<2x4xf32>
      tpu.vector_store %arg6[%c0_25, %c0_26], %48 {strides = array<i32>} : memref<2x4xf32, #tpu.memory_space<vmem>>, vector<2x4xf32>,
    } else {
    }
    %c0_9 = arith.constant 0 : index
    %c0_10 = arith.constant 0 : index
    %34 = vector.load %arg5[%c0_9, %c0_10] : memref<2x4xf32, #tpu.memory_space<vmem>>, vector<2x4xf32>
    %cst_11 = arith.constant dense<0.000000e+00> : vector<2x4xf32>
    %35 = vector.multi_reduction <add>, %30, %cst_11 [0] : vector<8x2x4xf32> to vector<2x4xf32>
    %36 = arith.addf %34, %35 : vector<2x4xf32>
    %c0_12 = arith.constant 0 : index
    %c0_13 = arith.constant 0 : index
    %37 = vector.load %arg5[%c0_12, %c0_13] : memref<2x4xf32, #tpu.memory_space<vmem>>, vector<2x4xf32>
    tpu.vector_store %arg5[%c0_12, %c0_13], %36 {strides = array<i32>} : memref<2x4xf32, #tpu.memory_space<vmem>>, vector<2x4xf32>,
    %c0_14 = arith.constant 0 : index
    %c0_15 = arith.constant 0 : index
    %38 = vector.load %arg6[%c0_14, %c0_15] : memref<2x4xf32, #tpu.memory_space<vmem>>, vector<2x4xf32>
    %39 = arith.mulf %30, %30 : vector<8x2x4xf32>
    %cst_16 = arith.constant dense<0.000000e+00> : vector<2x4xf32>
    %40 = vector.multi_reduction <add>, %39, %cst_16 [0] : vector<8x2x4xf32> to vector<2x4xf32>
    %41 = arith.addf %38, %40 : vector<2x4xf32>
    %c0_17 = arith.constant 0 : index
    %c0_18 = arith.constant 0 : index
    %42 = vector.load %arg6[%c0_17, %c0_18] : memref<2x4xf32, #tpu.memory_space<vmem>>, vector<2x4xf32>
    tpu.vector_store %arg6[%c0_17, %c0_18], %41 {strides = array<i32>} : memref<2x4xf32, #tpu.memory_space<vmem>>, vector<2x4xf32>,
    %c0_i32_19 = arith.constant 0 : i32
    %43 = arith.cmpi eq, %arg1, %c0_i32_19 : i32
    %44 = arith.extui %43 : i1 to i32
    %c0_i32_20 = arith.constant 0 : i32
    %45 = arith.cmpi ne, %44, %c0_i32_20 : i32
    scf.if %45 {
      %c0_21 = arith.constant 0 : index
      %c0_22 = arith.constant 0 : index
      %46 = vector.load %arg5[%c0_21, %c0_22] : memref<2x4xf32, #tpu.memory_space<vmem>>, vector<2x4xf32>
      %c0_23 = arith.constant 0 : index
      %c0_24 = arith.constant 0 : index
      %47 = vector.load %arg6[%c0_23, %c0_24] : memref<2x4xf32, #tpu.memory_space<vmem>>, vector<2x4xf32>
      %cst_25 = arith.constant 1.250000e-01 : f32
      %48 = vector.broadcast %cst_25 : f32 to vector<2x4xf32>
      %49 = arith.mulf %46, %48 : vector<2x4xf32>
      %cst_26 = arith.constant 8.000000e+00 : f32
      %50 = vector.broadcast %cst_26 : f32 to vector<2x4xf32>
      %51 = arith.mulf %50, %49 : vector<2x4xf32>
      %52 = arith.mulf %51, %49 : vector<2x4xf32>
      %53 = arith.subf %47, %52 : vector<2x4xf32>
      %cst_27 = arith.constant 0.142857149 : f32
      %54 = vector.broadcast %cst_27 : f32 to vector<2x4xf32>
      %55 = arith.mulf %53, %54 : vector<2x4xf32>
      %cst_28 = arith.constant 0.000000e+00 : f32
      %56 = vector.broadcast %cst_28 : f32 to vector<2x4xf32>
      %57 = arith.maximumf %55, %56 : vector<2x4xf32>
      %c0_29 = arith.constant 0 : index
      %c0_30 = arith.constant 0 : index
      %58 = vector.load %arg3[%c0_29, %c0_30] : memref<2x4xf32, #tpu.memory_space<vmem>>, vector<2x4xf32>
      tpu.vector_store %arg3[%c0_29, %c0_30], %49 {strides = array<i32>} : memref<2x4xf32, #tpu.memory_space<vmem>>, vector<2x4xf32>,
      %59 = math.sqrt %57 : vector<2x4xf32>
      %cst_31 = arith.constant 9.99999997E-7 : f32
      %60 = vector.broadcast %cst_31 : f32 to vector<2x4xf32>
      %61 = arith.addf %59, %60 : vector<2x4xf32>
      %cst_32 = arith.constant 1.000000e+00 : f32
      %62 = vector.broadcast %cst_32 : f32 to vector<2x4xf32>
      %63 = arith.divf %62, %61 : vector<2x4xf32>
      %c0_33 = arith.constant 0 : index
      %c0_34 = arith.constant 0 : index
      %64 = vector.load %arg4[%c0_33, %c0_34] : memref<2x4xf32, #tpu.memory_space<vmem>>, vector<2x4xf32>
      tpu.vector_store %arg4[%c0_33, %c0_34], %63 {strides = array<i32>} : memref<2x4xf32, #tpu.memory_space<vmem>>, vector<2x4xf32>,
    } else {
    }
    return
  }
  func.func @transform_0(%arg0: i32, %arg1: i32) -> (i32, i32, i32) {
    %c0_i32 = arith.constant 0 : i32
    %c0_i32_0 = arith.constant 0 : i32
    return %arg1, %arg0, %c0_i32 : i32, i32, i32
  }
  func.func @transform_1(%arg0: i32, %arg1: i32) -> (i32, i32) {
    %c0_i32 = arith.constant 0 : i32
    %c0_i32_0 = arith.constant 0 : i32
    return %arg0, %c0_i32 : i32, i32
  }
  func.func @transform_2(%arg0: i32, %arg1: i32) -> (i32, i32) {
    %c0_i32 = arith.constant 0 : i32
    %c0_i32_0 = arith.constant 0 : i32
    return %arg0, %c0_i32 : i32, i32
  }
}

</mosaic_0001>

<bundles_post_ra>
// kernel: tpu_custom_call.1
= control target key start
LH: loop header
LB: loop body
LE: loop exit
PB: predicated region body
PF: predicated region fallthrough
CT: control target
= control target key end

     0   :  { %8 = vsyncpa [#allocation5], 0  ;;  %vm668_vm0 = vcmask 25600   ;;  %v389_v0 = vmov 0.0   ;;  %s665_s0 = inlined_call_operand.vmem [shape: f32[8,2,4], index: 0, kind: input, shape index: {}]   ;;  %s666_s1 = inlined_call_operand.hbm [shape: f32[2,4], index: 1, kind: output, shape index: {0}]   ;;  %s667_s2 = inlined_call_operand.hbm [shape: f32[2,4], index: 2, kind: output, shape index: {1}]  }
   0x1   :  { %186 = vst.msk [vmem:[#allocation2] sm:$0x3] %vm668_vm0, %v389_v0  ;;  %v414_v1 = vld [vmem:[%s665_s0] sm:$0x3]  ;;  %v419_v2 = vld [vmem:[%s665_s0 + $0x2] sm:$0x3] }
   0x2   :  { %187 = vst.msk [vmem:[#allocation3] sm:$0x3] %vm668_vm0, %v389_v0  ;;  %v424_v3 = vld [vmem:[%s665_s0 + $0x4] sm:$0x3]  ;;  %v429_v4 = vld [vmem:[%s665_s0 + $0x6] sm:$0x3]  ;;  %vm20_vm1 = vcmp.ne.f32.partialorder %v414_v1, %v414_v1  ;;  %vm21_vm2 = vcmp.ne.f32.partialorder %v419_v2, %v419_v2 }
   0x3   :  { %v434_v5 = vld [vmem:[%s665_s0 + $0x8] sm:$0x3]  ;;  %v439_v6 = vld [vmem:[%s665_s0 + $0xa] sm:$0x3]  ;;  %v444_v7 = vld [vmem:[%s665_s0 + $0xc] sm:$0x3]  ;;  %vm22_vm3 = vcmp.ne.f32.partialorder %v424_v3, %v424_v3  ;;  %vm23_vm4 = vcmp.ne.f32.partialorder %v429_v4, %v429_v4 }
   0x4   :  { %v449_v8 = vld [vmem:[%s665_s0 + $0xe] sm:$0x3]  ;;  %v28_v9 = vand.u32 2147483647, %v414_v1  ;;  %v29_v10 = vand.u32 2147483647, %v419_v2 }
   0x5   :  { %v30_v11 = vand.u32 2147483647, %v424_v3  ;;  %v31_v12 = vand.u32 2147483647, %v429_v4  ;;  %v32_v13 = vand.u32 2147483647, %v434_v5 }
   0x6   :  { %v33_v14 = vand.u32 2147483647, %v439_v6  ;;  %v34_v15 = vand.u32 2147483647, %v444_v7  ;;  %v35_v16 = vand.u32 2147483647, %v449_v8 }
   0x7   :  { %9 = vsyncpa [#allocation7], 0  ;;  %vm475_vm9 = vcmp.eq.f32.partialorder %v28_v9, inf  ;;  %v673_v17 = vmov 0  ;;  %vm479_vm10 = vcmp.eq.f32.partialorder %v29_v10, inf  ;;  %v675_v18 = vmov 0 }
   0x8   :  { %v674_v17 = vsel %vm475_vm9, 4294967295, %v673_v17  ;;  %v676_v18 = vsel %vm479_vm10, 4294967295, %v675_v18  ;;  %vm483_vm11 = vcmp.eq.f32.partialorder %v30_v11, inf  ;;  %vm487_vm12 = vcmp.eq.f32.partialorder %v31_v12, inf  ;;  %s390_s0 = smov [#allocation4]   ;;  %s281_s28 = sshll.u32 %s666_s1, 4  ;;  %s282_s28 = int_to_ptr.hbm [resolvable:$true] %s281_s28 }
   0x9   :  { %v679_v20 = vmov 0  ;;  %vm491_vm13 = vcmp.eq.f32.partialorder %v32_v13, inf  ;;  %v681_v21 = vmov 0  ;;  %vm495_vm14 = vcmp.eq.f32.partialorder %v33_v14, inf  ;;  %s279_s25 = sshll.u32 %s390_s0, 4  ;;  %s391_s1 = smov [#allocation6]   ;;  %s280_s25 = int_to_ptr.vmem [resolvable:$true] %s279_s25 }
   0xa   :  { %v680_v20 = vsel %vm487_vm12, 4294967295, %v679_v20  ;;  %v682_v21 = vsel %vm491_vm13, 4294967295, %v681_v21  ;;  %vm499_vm15 = vcmp.eq.f32.partialorder %v34_v15, inf  ;;  %vm503_vm0 = vcmp.eq.f32.partialorder %v35_v16, inf  ;;  %s290_s29 = sshll.u32 %s391_s1, 4  ;;  %s292_s4 = sshll.u32 %s667_s2, 4  ;;  %s291_s29 = int_to_ptr.vmem [resolvable:$true] %s290_s29  ;;  %s293_s4 = int_to_ptr.hbm [resolvable:$true] %s292_s4 }
   0xb   :  { %v306_v25 = vsel %vm20_vm1, 1.0, %v389_v0  ;;  %vm68_vm8 = vcmp.gt.f32.partialorder %v414_v1, 0.0  ;;  %vm69_vm7 = vcmp.gt.f32.partialorder %v419_v2, 0.0  ;;  %v307_v26 = vsel %vm21_vm2, 1.0, %v389_v0 }
   0xc   :  { %v308_v27 = vsel %vm22_vm3, 1.0, %v389_v0  ;;  %vm70_vm6 = vcmp.gt.f32.partialorder %v424_v3, 0.0  ;;  %vm525_vm1 = vmand %vm475_vm9, %vm68_vm8  ;;  %v309_v29 = vsel %vm23_vm4, 1.0, %v389_v0  ;;  %vm691_vm2 = vcmp.ne.f32.partialorder %v434_v5, %v434_v5 }
   0xd   :  { %v310_v30 = vsel %vm691_vm2, 1.0, %v389_v0  ;;  %vm692_vm3 = vcmp.ne.f32.partialorder %v439_v6, %v439_v6  ;;  %vm544_vm5 = vmand %vm479_vm10, %vm69_vm7  ;;  %vm695_vm4 = vcmp.ne.f32.partialorder %v444_v7, %v444_v7  ;;  %vm696_vm2 = vcmp.ne.f32.partialorder %v449_v8, %v449_v8 }
   0xe   :  { %v311_v31 = vsel %vm692_vm3, 1.0, %v389_v0  ;;  %v312_v33 = vsel %vm695_vm4, 1.0, %v389_v0  ;;  %v313_v34 = vsel %vm696_vm2, 1.0, %v389_v0  ;;  %v60_v35 = vmul.f32 -1.0, %v306_v25  ;;  %vm78_vm8 = vmand %vm483_vm11, %vm70_vm6 }
   0xf   :  { %vm73_vm3 = vcmp.gt.f32.partialorder %v439_v6, 0.0  ;;  %v61_v36 = vmul.f32 -1.0, %v307_v26  ;;  %v62_v37 = vmul.f32 -1.0, %v308_v27  ;;  %vm74_vm7 = vcmp.gt.f32.partialorder %v444_v7, 0.0 }
  0x10   :  { %vm697_vm10 = vcmp.gt.f32.partialorder %v429_v4, 0.0  ;;  %v314_v38 = vsel %vm525_vm1, 1.0, %v389_v0  ;;  %v63_v39 = vmul.f32 -1.0, %v309_v29  ;;  %v64_v40 = vmul.f32 -1.0, %v310_v30 }
  0x11   :  { %vm79_vm4 = vmand %vm487_vm12, %vm697_vm10  ;;  %vm75_vm2 = vcmp.gt.f32.partialorder %v449_v8, 0.0  ;;  %vm698_vm9 = vcmp.gt.f32.partialorder %v434_v5, 0.0  ;;  %v315_v42 = vsel %vm544_vm5, 1.0, %v389_v0  ;;  %v65_v43 = vmul.f32 -1.0, %v311_v31 }
  0x12   :  { %vm572_vm6 = vmand %vm491_vm13, %vm698_vm9  ;;  %v66_v44 = vmul.f32 -1.0, %v312_v33  ;;  %v316_v45 = vsel %vm78_vm8, 1.0, %v389_v0  ;;  %vm108_vm1 = vcmp.lt.f32.partialorder %v414_v1, 0.0  ;;  %v67_v46 = vmul.f32 -1.0, %v313_v34 }
  0x13   :  { %vm81_vm10 = vmand %vm495_vm14, %vm73_vm3  ;;  %v317_v47 = vsel %vm79_vm4, 1.0, %v389_v0  ;;  %v100_v48 = vadd.f32 %v314_v38, %v60_v35  ;;  %vm109_vm13 = vcmp.lt.f32.partialorder %v419_v2, 0.0  ;;  %v101_v49 = vadd.f32 %v315_v42, %v61_v36 }
  0x14   :  { %vm82_vm9 = vmand %vm499_vm15, %vm74_vm7  ;;  %v318_v50 = vsel %vm572_vm6, 1.0, %v389_v0  ;;  %v319_v51 = vsel %vm81_vm10, 1.0, %v389_v0  ;;  %v102_v52 = vadd.f32 %v316_v45, %v62_v37  ;;  %vm701_vm4 = vnez %v674_v17 }
  0x15   :  { %vm83_vm5 = vmand %vm503_vm0, %vm75_vm2  ;;  %v320_v53 = vsel %vm82_vm9, 1.0, %v389_v0  ;;  %v103_v54 = vadd.f32 %v317_v47, %v63_v39  ;;  %vm114_vm3 = vcmp.lt.f32.partialorder %v444_v7, 0.0  ;;  %vm702_vm8 = vnez %v676_v18 }
  0x16   :  { %vm116_vm2 = vmand %vm701_vm4, %vm108_vm1  ;;  %v321_v56 = vsel %vm83_vm5, 1.0, %v389_v0  ;;  %vm115_vm6 = vcmp.lt.f32.partialorder %v449_v8, 0.0  ;;  %vm703_vm10 = vcmp.lt.f32.partialorder %v424_v3, 0.0  ;;  %v104_v59 = vadd.f32 %v318_v50, %v64_v40 }
  0x17   :  { %vm117_vm12 = vmand %vm702_vm8, %vm109_vm13  ;;  %v322_v55 = vsel %vm116_vm2, 1.0, %v389_v0  ;;  %v105_v60 = vadd.f32 %v319_v51, %v65_v43  ;;  %vm704_vm1 = vcmp.lt.f32.partialorder %v429_v4, 0.0  ;;  %vm705_vm13 = vnez %v680_v20 }
  0x18   :  { %vm118_vm7 = vmand %vm483_vm11, %vm703_vm10  ;;  %v323_v57 = vsel %vm117_vm12, 1.0, %v389_v0  ;;  %v140_v58 = vmul.f32 2.0, %v322_v55  ;;  %v106_v63 = vadd.f32 %v320_v53, %v66_v44  ;;  %vm706_vm5 = vcmp.lt.f32.partialorder %v434_v5, 0.0 }
  0x19   :  { %vm119_vm9 = vmand %vm705_vm13, %vm704_vm1  ;;  %v324_v61 = vsel %vm118_vm7, 1.0, %v389_v0  ;;  %v141_v62 = vmul.f32 2.0, %v323_v57  ;;  %vm707_vm8 = vnez %v682_v21  ;;  %v107_v9 = vadd.f32 %v321_v56, %v67_v46 }
  0x1a   :  { %vm120_vm4 = vmand %vm707_vm8, %vm706_vm5  ;;  %v325_v1 = vsel %vm119_vm9, 1.0, %v389_v0  ;;  %v142_v2 = vmul.f32 2.0, %v324_v61  ;;  %v148_v3 = vadd.f32 %v140_v58, %v100_v48  ;;  %vm708_vm11 = vcmp.lt.f32.partialorder %v439_v6, 0.0  ;;  %v188_v48 = vld [vmem:[#allocation2] sm:$0x3] }
  0x1b   :  { %vm121_vm12 = vmand %vm495_vm14, %vm708_vm11  ;;  %v326_v4 = vsel %vm120_vm4, 1.0, %v389_v0  ;;  %v143_v10 = vmul.f32 2.0, %v325_v1  ;;  %v149_v11 = vadd.f32 %v141_v62, %v101_v49  ;;  %vm709_vm2 = vcmask 25600  }
  0x1c   :  { %vm122_vm7 = vmand %vm499_vm15, %vm114_vm3  ;;  %v327_v5 = vsel %vm121_vm12, 1.0, %v389_v0  ;;  %v144_v12 = vmul.f32 2.0, %v326_v4  ;;  %v150_v13 = vadd.f32 %v142_v2, %v102_v52  ;;  %v190_v14 = vsel %vm709_vm2, %v148_v3, 0.0 }
  0x1d   :  { %vm123_vm14 = vmand %vm503_vm0, %vm115_vm6  ;;  %v328_v6 = vsel %vm122_vm7, 1.0, %v389_v0  ;;  %v145_v15 = vmul.f32 2.0, %v327_v5  ;;  %v151_v16 = vadd.f32 %v143_v10, %v103_v54  ;;  %v208_v24 = vmul.f32 %v148_v3, %v148_v3 }
  0x1e   :  { %vm710_vm10 = vmmov %vm709_vm2  ;;  %v329_v17 = vsel %vm123_vm14, 1.0, %v389_v0  ;;  %v146_v18 = vmul.f32 2.0, %v328_v6  ;;  %v152_v19 = vadd.f32 %v144_v12, %v104_v59  ;;  %v209_v28 = vmul.f32 %v149_v11, %v149_v11  ;;  %v207_v59 = vld [vmem:[#allocation3] sm:$0x3] }
  0x1f   :  { %v191_v7 = vsel %vm710_vm10, %v149_v11, 0.0  ;;  %v147_v21 = vmul.f32 2.0, %v329_v17  ;;  %v153_v22 = vadd.f32 %v145_v15, %v105_v60  ;;  %vm711_vm15 = vmmov %vm709_vm2  ;;  %v210_v29 = vmul.f32 %v150_v13, %v150_v13 }
  0x20   :  { %v192_v20 = vadd.f32 %v191_v7, %v190_v14  ;;  %v193_v23 = vsel %vm711_vm15, %v150_v13, 0.0  ;;  %vm712_vm3 = vmmov %vm709_vm2  ;;  %v154_v26 = vadd.f32 %v146_v18, %v106_v63  ;;  %v211_v31 = vmul.f32 %v151_v16, %v151_v16 }
  0x21   :  { %v195_v8 = vsel %vm712_vm3, %v151_v16, 0.0  ;;  %vm713_vm0 = vmmov %vm709_vm2  ;;  %v155_v32 = vadd.f32 %v147_v21, %v107_v9  ;;  %v212_v33 = vmul.f32 %v152_v19, %v152_v19  ;;  %v213_v41 = vmul.f32 %v153_v22, %v153_v22 }
  0x22   :  { %v194_v25 = vadd.f32 %v193_v23, %v192_v20  ;;  %v197_v27 = vsel %vm713_vm0, %v152_v19, 0.0  ;;  %vm714_vm6 = vmmov %vm713_vm0  ;;  %v214_v46 = vmul.f32 %v154_v26, %v154_v26 }
  0x23   :  { %v199_v0 = vsel %vm714_vm6, %v153_v22, 0.0  ;;  %vm715_vm1 = vmmov %vm713_vm0  ;;  %v215_v51 = vmul.f32 %v155_v32, %v155_v32 }
  0x24   :  { %v196_v30 = vadd.f32 %v195_v8, %v194_v25  ;;  %v216_v35 = vsel %vm715_vm1, %v208_v24, 0.0  ;;  %vm716_vm13 = vmmov %vm713_vm0 }
  0x25   :  { %v217_v36 = vsel %vm716_vm13, %v209_v28, 0.0  ;;  %vm717_vm9 = vmmov %vm713_vm0 }
  0x26   :  { %v198_v34 = vadd.f32 %v197_v27, %v196_v30  ;;  %v219_v37 = vsel %vm717_vm9, %v210_v29, 0.0  ;;  %vm718_vm5 = vmmov %vm713_vm0  ;;  %v218_v39 = vadd.f32 %v217_v36, %v216_v35 }
  0x27   :  { %v201_v38 = vsel %vm718_vm5, %v154_v26, 0.0  ;;  %vm719_vm8 = vmmov %vm713_vm0 }
  0x28   :  { %v200_v40 = vadd.f32 %v199_v0, %v198_v34  ;;  %v221_v42 = vsel %vm719_vm8, %v211_v31, 0.0  ;;  %vm720_vm4 = vmmov %vm713_vm0  ;;  %v220_v44 = vadd.f32 %v219_v37, %v218_v39 }
  0x29   :  { %v203_v43 = vsel %vm720_vm4, %v155_v32, 0.0  ;;  %vm721_vm11 = vmmov %vm713_vm0 }
  0x2a   :  { %v202_v45 = vadd.f32 %v201_v38, %v200_v40  ;;  %v223_v47 = vsel %vm721_vm11, %v212_v33, 0.0  ;;  %v222_v49 = vadd.f32 %v221_v42, %v220_v44  ;;  %vm722_vm12 = vmmov %vm713_vm0 }
  0x2b   :  { %v225_v52 = vsel %vm722_vm12, %v213_v41, 0.0  ;;  %vm723_vm7 = vmmov %vm713_vm0 }
  0x2c   :  { %v204_v50 = vadd.f32 %v203_v43, %v202_v45  ;;  %v224_v53 = vadd.f32 %v223_v47, %v222_v49  ;;  %v227_v55 = vsel %vm723_vm7, %v214_v46, 0.0  ;;  %vm724_vm2 = vmmov %vm713_vm0 }
  0x2d   :  { %vm725_vm14 = vmmov %vm713_vm0 }
  0x2e   :  { %v205_v54 = vadd.f32 %v204_v50, %v188_v48  ;;  %v226_v56 = vadd.f32 %v225_v52, %v224_v53  ;;  %v229_v57 = vsel %vm725_vm14, %v215_v51, 0.0  ;;  %vm726_vm10 = vmmov %vm713_vm0 }
  0x2f   :  { %vm727_vm15 = vmmov %vm713_vm0 }
  0x30   :  { %206 = vst.msk [vmem:[#allocation2] sm:$0x3] %vm724_vm2, %v205_v54  ;;  %v228_v58 = vadd.f32 %v227_v55, %v226_v56  ;;  %vm728_vm5 = vmmov %vm724_vm2 }
  0x32   :  { %v230_v60 = vadd.f32 %v229_v57, %v228_v58 }
  0x34   :  { %v231_v61 = vadd.f32 %v230_v60, %v207_v59 }
  0x36   :  { %232 = vst.msk [vmem:[#allocation3] sm:$0x3] %vm726_vm10, %v231_v61 }
  0x37   :  { %v236_v62 = vld [vmem:[#allocation2] sm:$0x3] }
  0x38   :  { %v238_v63 = vmul.f32 0.125, %v236_v62 }
  0x3a   :  { %v239_v1 = vmul.f32 8.0, %v238_v63  ;;  %244 = vst.msk [vmem:[#allocation4] sm:$0x3] %vm727_vm15, %v238_v63 }
  0x3b   :  { %284 = dma.vmem_to_hbm [thread:$0]  %s280_s25, 32, %s282_s28, [#allocation5]  }
  0x3c   :  { %v240_v2 = vmul.f32 %v239_v1, %v238_v63 }
  0x3d   :  { %v237_v3 = vld [vmem:[#allocation3] sm:$0x3] }
  0x3e   :  { %v241_v9 = vsub.f32 %v237_v3, %v240_v2 }
  0x40   :  { %v242_v4 = vmul.f32 0.14285715, %v241_v9 }
  0x42   :  { %v243_v10 = vmax.f32 %v242_v4, 0.0 }
  0x44   :  { %333 = vrsqrt.f32 %v243_v10  ;;  %vm252_vm3 = vcmp.eq.f32.partialorder %v243_v10, inf  ;;  %v255_v16 = vand.u32 2147483648, %v243_v10  ;;  %vm254_vm0 = vcmp.eq.f32.partialorder %v243_v10, 0.0 }
  0x4a   :  { %v334_v11 = vpop.eup %333 }
  0x4b   :  { %v246_v5 = vmul.f32 %v334_v11, %v243_v10 }
  0x4d   :  { %v247_v12 = vmul.f32 %v334_v11, %v246_v5 }
  0x4f   :  { %v248_v13 = vmul.f32 0.5, %v247_v12 }
  0x51   :  { %v249_v14 = vsub.f32 1.5, %v248_v13 }
  0x53   :  { %v250_v6 = vmul.f32 %v334_v11, %v249_v14 }
  0x55   :  { %v251_v15 = vmul.f32 %v250_v6, %v243_v10 }
  0x57   :  { %v253_v7 = vsel %vm252_vm3, %v243_v10, %v251_v15 }
  0x58   :  { %v256_v17 = vsel %vm254_vm0, %v255_v16, %v253_v7 }
  0x59   :  { %v257_v18 = vadd.f32 1e-06, %v256_v17 }
  0x5b   :  { %335 = vrcp.f32 %v257_v18  ;;  %v269_v22 = vand.u32 2147483648, %v257_v18  ;;  %v267_v8 = vand.u32 2147483647, %v257_v18  ;;  %vm263_vm1 = vweird.f32 %v257_v18 }
  0x5d   :  { %v270_v24 = vor.u32 1.1754944e-38, %v269_v22  ;;  %vm268_vm9 = vcmp.eq.f32.partialorder %v267_v8, 8.507059e+37 }
  0x61   :  { %v336_v19 = vpop.eup %335 }
  0x62   :  { %v259_v20 = vmul.f32 %v336_v19, %v257_v18  ;;  %vm264_vm6 = vweird.f32 %v336_v19 }
  0x63   :  { %vm265_vm13 = vmor %vm263_vm1, %vm264_vm6 }
  0x64   :  { %v260_v21 = vsub.f32 1.0, %v259_v20 }
  0x66   :  { %v261_v23 = vmul.f32 %v336_v19, %v260_v21 }
  0x68   :  { %v262_v25 = vadd.f32 %v336_v19, %v261_v23 }
  0x6a   :  { %v266_v26 = vsel %vm265_vm13, %v336_v19, %v262_v25 }
  0x6b   :  { %v271_v27 = vsel %vm268_vm9, %v270_v24, %v266_v26 }
  0x6c   :  { %273 = vst.msk [vmem:[#allocation6] sm:$0x3] %vm728_vm5, %v271_v27 }
  0x6d   :  { %295 = dma.vmem_to_hbm [thread:$0]  %s291_s29, 32, %s293_s4, [#allocation7]  }
  0x6e   :  { %385 = dma.done.wait [#allocation5], 32  }
  0x6f   :  { %386 = vsyncadd [#allocation5], 4294967264 }
  0x70   :  { %387 = dma.done.wait [#allocation7], 32  }
  0x71   :  { %388 = vsyncadd [#allocation7], 4294967264 }
  0x72   :  { %304 = vsyncpa [#allocation5], 1 }
  0x73   :  { %305 = vsyncpa [#allocation7], 1 }

</bundles_post_ra>
